<compile_context>
chip_gen: v5e
topology: v5e:2x2
jax: 0.10.0
libtpu: 0.0.40
codegen_flags: <defaults>
</compile_context>

<pallas_src>
import functools

import jax
import jax.numpy as jnp
from jax.experimental import pallas as pl
from jax.experimental.pallas import tpu as pltpu

IN_FEATURES = 10
OUT_FEATURES = 5


def _linear_kernel(xT_ref, w_ref, b_ref, oT_ref):
    # xT_ref: (IN_FEATURES, TILE_B)        streamed, batch on the lane axis
    # w_ref:  (OUT_FEATURES, IN_FEATURES)  resident weight (torch layout, no T)
    # b_ref:  (OUT_FEATURES, 1)            resident bias column
    # oT_ref: (OUT_FEATURES, TILE_B)       lane-dense output tile
    acc = jnp.dot(w_ref[...], xT_ref[...], preferred_element_type=jnp.float32)
    oT_ref[...] = (acc + b_ref[...]).astype(oT_ref.dtype)


def _round_up(n, m):
    return ((n + m - 1) // m) * m


@functools.partial(jax.jit, static_argnames=("tile_b",))
def linear_forward(x, weight, bias, *, tile_b=2048):
    """y = x @ weight.T + bias  (matches torch nn.Linear semantics).

    x: (B, IN_FEATURES) or (IN_FEATURES,)
    weight: (OUT_FEATURES, IN_FEATURES)   bias: (OUT_FEATURES,)
    """
    squeeze = x.ndim == 1
    if squeeze:
        x = x[None, :]
    B = x.shape[0]

    # Layout plumbing (outside the kernel): batch onto the lane axis.
    xT = x.T                               # (IN_FEATURES, B)
    b_col = bias.reshape(OUT_FEATURES, 1)  # (OUT_FEATURES, 1)

    # Lane tile: multiple of 128, capped so a tiny batch still compiles cleanly.
    tb = min(tile_b, _round_up(B, 128))
    grid = (pl.cdiv(B, tb),)

    yT = pl.pallas_call(
        _linear_kernel,
        out_shape=jax.ShapeDtypeStruct((OUT_FEATURES, B), x.dtype),
        grid=grid,
        in_specs=[
            # streamed activations: new batch tile every grid step
            pl.BlockSpec((IN_FEATURES, tb), lambda i: (0, i)),
            # weight + bias stay resident across the whole grid
            pl.BlockSpec((OUT_FEATURES, IN_FEATURES), lambda i: (0, 0)),
            pl.BlockSpec((OUT_FEATURES, 1), lambda i: (0, 0)),
        ],
        out_specs=pl.BlockSpec((OUT_FEATURES, tb), lambda i: (0, i)),
        compiler_params=pltpu.CompilerParams(
            dimension_semantics=("parallel",),
        ),
    )(xT, weight, b_col)

    y = yT.T  # back to (B, OUT_FEATURES)
    if squeeze:
        y = y[0]
    return y


if __name__ == "__main__":
    key = jax.random.PRNGKey(0)
    kx, kw, kb = jax.random.split(key, 3)

    B = 16  # small batch for the demo
    x = jax.random.normal(kx, (B, IN_FEATURES), dtype=jnp.float32)

    # Deterministic parameter init (mimics nn.Linear uniform(-1/sqrt(fan_in), +))
    bound = 1.0 / jnp.sqrt(jnp.float32(IN_FEATURES))
    weight = jax.random.uniform(
        kw, (OUT_FEATURES, IN_FEATURES), dtype=jnp.float32,
        minval=-bound, maxval=bound)
    bias = jax.random.uniform(
        kb, (OUT_FEATURES,), dtype=jnp.float32, minval=-bound, maxval=bound)

    y = linear_forward(x, weight, bias)
    jax.block_until_ready(y)

    # correctness check against plain JAX reference
    y_ref = x @ weight.T + bias
    assert y.shape == (B, OUT_FEATURES)
    assert jnp.allclose(y, y_ref, atol=1e-5, rtol=1e-5)

    print("KERNEL_OK")
</pallas_src>

<mosaic_0001>
module attributes {stable_mosaic.version = 11 : i64} {
  func.func @_linear_kernel(%arg0: i32, %arg1: memref<10x128xf32, #tpu.memory_space<vmem>>, %arg2: memref<5x10xf32, #tpu.memory_space<vmem>>, %arg3: memref<5x1xf32, #tpu.memory_space<vmem>>, %arg4: memref<5x128xf32, #tpu.memory_space<vmem>>) attributes {dimension_semantics = [#tpu.dimension_semantics<parallel>], iteration_bounds = array<i64: 1>, scalar_prefetch = 0 : i64, scratch_operands = 0 : i64, tpu.core_type = #tpu.core_type<tc>, window_params = [{transform_indices = @transform_0, window_bounds = array<i64: 10, 128>}, {pipeline_mode = #tpu.pipeline_mode<synchronous>, transform_indices = @transform_1, window_bounds = array<i64: 5, 10>}, {pipeline_mode = #tpu.pipeline_mode<synchronous>, transform_indices = @transform_2, window_bounds = array<i64: 5, 1>}, {transform_indices = @transform_3, window_bounds = array<i64: 5, 128>}]} {
    %c0 = arith.constant 0 : index
    %c0_0 = arith.constant 0 : index
    %0 = vector.load %arg2[%c0, %c0_0] : memref<5x10xf32, #tpu.memory_space<vmem>>, vector<5x10xf32>
    %c0_1 = arith.constant 0 : index
    %c0_2 = arith.constant 0 : index
    %1 = vector.load %arg1[%c0_1, %c0_2] : memref<10x128xf32, #tpu.memory_space<vmem>>, vector<10x128xf32>
    %cst = arith.constant dense<0.000000e+00> : vector<5x128xf32>
    %2 = tpu.matmul %0, %1, %cst {dimension_numbers = #tpu.dot_dimension_numbers<[1], [0], [0], [1], [0, 0, 1, 1], [], []>} : vector<5x10xf32>, vector<10x128xf32>, vector<5x128xf32> -> vector<5x128xf32>
    %c0_3 = arith.constant 0 : index
    %c0_4 = arith.constant 0 : index
    %3 = vector.load %arg3[%c0_3, %c0_4] : memref<5x1xf32, #tpu.memory_space<vmem>>, vector<5x1xf32>
    %4 = vector.broadcast %3 : vector<5x1xf32> to vector<5x128xf32>
    %5 = arith.addf %2, %4 : vector<5x128xf32>
    %c0_5 = arith.constant 0 : index
    %c0_6 = arith.constant 0 : index
    %6 = vector.load %arg4[%c0_5, %c0_6] : memref<5x128xf32, #tpu.memory_space<vmem>>, vector<5x128xf32>
    tpu.vector_store %arg4[%c0_5, %c0_6], %5 {strides = array<i32>} : memref<5x128xf32, #tpu.memory_space<vmem>>, vector<5x128xf32>,
    return
  }
  func.func @transform_0(%arg0: i32) -> (i32, i32) {
    %c0_i32 = arith.constant 0 : i32
    %c0_i32_0 = arith.constant 0 : i32
    return %c0_i32, %arg0 : i32, i32
  }
  func.func @transform_1(%arg0: i32) -> (i32, i32) {
    %c0_i32 = arith.constant 0 : i32
    %c0_i32_0 = arith.constant 0 : i32
    %c0_i32_1 = arith.constant 0 : i32
    return %c0_i32, %c0_i32_0 : i32, i32
  }
  func.func @transform_2(%arg0: i32) -> (i32, i32) {
    %c0_i32 = arith.constant 0 : i32
    %c0_i32_0 = arith.constant 0 : i32
    %c0_i32_1 = arith.constant 0 : i32
    return %c0_i32, %c0_i32_0 : i32, i32
  }
  func.func @transform_3(%arg0: i32) -> (i32, i32) {
    %c0_i32 = arith.constant 0 : i32
    %c0_i32_0 = arith.constant 0 : i32
    return %c0_i32, %arg0 : i32, i32
  }
}

</mosaic_0001>

<bundles_post_ra>
// kernel: linear_forward.1
= control target key start
LH: loop header
LB: loop body
LE: loop exit
PB: predicated region body
PF: predicated region fallthrough
CT: control target
= control target key end

     0   :  { %vm28_vm0 = vcmask 1041408   ;;  %vm24_vm1 = vcmask 80896   ;;  %s137_s0 = inlined_call_operand.vmem [shape: f32[10,16], index: 0, kind: input, shape index: {}]   ;;  %s138_s1 = inlined_call_operand.vmem [shape: f32[5,10], index: 1, kind: input, shape index: {}]   ;;  %s139_s2 = inlined_call_operand.vmem [shape: f32[5,1], index: 2, kind: input, shape index: {}]   ;;  %s140_s3 = inlined_call_operand.hbm [shape: f32[5,16], index: 3, kind: output, shape index: {}]  }
   0x1   :  { %v17_v0 = vld [vmem:[%s137_s0 + $0x8] sm:$0x3]  ;;  %v16_v1 = vld [vmem:[%s137_s0] sm:$0xff] }
   0x2   :  { %v15_v2 = vld [vmem:[%s138_s1] sm:$0x1f]  ;;  %69 = vmatpush.msk.msra.mxu0 %vm28_vm0, %v17_v0 }
   0x3   :  { %v18_v3 = vld [vmem:[%s139_s2] sm:$0x1f] }
   0x4   :  { %8 = vsyncpa [#allocation3], 0  ;;  %v100_v4 = vmov 0   ;;  %47 = vmatpush.msra.mxu0 %v16_v1  ;;  %s101_s20 = smov [#allocation2]   ;;  %s60_s23 = sshll.u32 %s140_s3, 4  ;;  %s61_s23 = int_to_ptr.hbm [resolvable:$true] %s60_s23 }
   0x5   :  { %73 = vset.pattern.permute.xlu0 %v100_v4  ;;  %70 = vmatmul.msk.f32.vlgmr.msra.gmra.mxu0 %vm24_vm1, %v15_v2  ;;  %s58_s21 = sshll.u32 %s101_s20, 4  ;;  %s59_s21 = int_to_ptr.vmem [resolvable:$true] %s58_s21 }
   0x6   :  { %21 = vperm.xlu0 %73, %v18_v3  }
  0x78   :  { %v22_v5 = vpop.permute.xlu0 %21 }
  0x82   :  { %v49_v6 = vpop.f32.mrf.mxu0 }
  0x83   :  { %v50_v7 = vadd.f32 %v49_v6, %v22_v5 }
  0x85   :  { %52 = vst [vmem:[#allocation2] sm:$0x1f] %v50_v7 }
  0x86   :  { %63 = dma.vmem_to_hbm [thread:$0]  %s59_s21, 128, %s61_s23, [#allocation3]  }
  0x87   :  { %98 = dma.done.wait [#allocation3], 128  }
  0x88   :  { %99 = vsyncadd [#allocation3], 4294967168 }
  0x89   :  { %68 = vsyncpa [#allocation3], 1 }

</bundles_post_ra>
